<compile_context>
chip_gen: v5e
topology: v5e:2x2
jax: 0.10.0
libtpu: 0.0.40
codegen_flags: <defaults>
</compile_context>

<pallas_src>
import jax
import jax.numpy as jnp
from jax.experimental import pallas as pl
from jax.experimental.pallas import tpu as pltpu


def _round_up(x, m):
    return ((x + m - 1) // m) * m


def _make_fm_kernel(DP, GEP):
    """Kernel over one batch tile. stream_ref: (ROWS, tb), w_ref: (DP, GEP)."""

    def kernel(stream_ref, w_ref, out_ref):
        ue = stream_ref[:DP, :].astype(jnp.float32)                 # (DP, tb)
        me = stream_ref[DP:2 * DP, :].astype(jnp.float32)           # (DP, tb)
        gen = stream_ref[2 * DP:2 * DP + GEP, :]                    # (GEP, tb)
        tail = stream_ref[2 * DP + GEP:, :].astype(jnp.float32)     # (sub, tb)

        # genre_emb = W @ genres (+ linear bias via the ones row) on the MXU,
        # f32 accumulation.  Zero-padded rows/cols contribute nothing.
        ge = jnp.dot(w_ref[...], gen, preferred_element_type=jnp.float32)  # (DP, tb)

        # sum(ue*me) + sum(ue*ge) + sum(me*ge)  ==  sum(ue*me + (ue+me)*ge)
        interact = ue * me + (ue + me) * ge                         # (DP, tb)

        # tail holds (user_bias + global_bias), movie_bias, zeros.
        out_ref[...] = (jnp.sum(interact, axis=0, keepdims=True)
                        + jnp.sum(tail, axis=0, keepdims=True))     # (1, tb)

    return kernel


def fm_forward(params, user_ids, movie_ids, movie_genres, *,
               tb=8192, input_dtype=jnp.float32):
    """Pallas FM forward. Returns (B,) float32 predictions."""
    B = user_ids.shape[0]
    D = params["user_embedding"].shape[1]
    G = movie_genres.shape[1]

    dt = jnp.dtype(input_dtype)
    sub = max(8, 32 // dt.itemsize)          # sublane alignment: 8 (f32) / 16 (bf16)
    DP = _round_up(D, sub)                   # embedding section rows
    GEP = _round_up(G + 1, sub)              # genres + ones row, padded
    ROWS = 2 * DP + GEP + sub                # + bias tail section

    # ---- batch tile selection ----------------------------------------------
    tb = max(128, _round_up(int(tb), 128))
    # keep >=2 grid steps for large B so the parallel axis can shard across
    # the two v7x TensorCores
    tb = min(tb, max(128, _round_up(pl.cdiv(B, 2), 128)))
    # keep the double-buffered stream well inside scoped VMEM (v7x: 64 MiB phys)
    vmem_budget = 24 << 20
    tb_vmem = max(128, (vmem_budget // (2 * ROWS * dt.itemsize)) // 128 * 128)
    tb = min(tb, tb_vmem)

    B_pad = _round_up(B, tb)
    pad = B_pad - B
    if pad:
        user_ids = jnp.pad(user_ids, (0, pad))
        movie_ids = jnp.pad(movie_ids, (0, pad))
        movie_genres = jnp.pad(movie_genres, ((0, pad), (0, 0)))

    # ---- glue: gathers + one concatenated lane-dense stream (ROWS, B_pad) ----
    ue = jnp.take(params["user_embedding"], user_ids, axis=0).T.astype(dt)     # (D, Bp)
    me = jnp.take(params["movie_embedding"], movie_ids, axis=0).T.astype(dt)   # (D, Bp)
    gen = movie_genres.T.astype(dt)                                            # (G, Bp)
    ub = (jnp.take(params["user_bias"], user_ids, axis=0).T
          + params["global_bias"][0]).astype(dt)                               # (1, Bp)
    mb = jnp.take(params["movie_bias"], movie_ids, axis=0).T.astype(dt)        # (1, Bp)

    def _zrows(n):
        return jnp.zeros((n, B_pad), dt)

    stream = jnp.concatenate([
        ue, _zrows(DP - D),
        me, _zrows(DP - D),
        gen, jnp.ones((1, B_pad), dt), _zrows(GEP - G - 1),
        ub, mb, _zrows(sub - 2),
    ], axis=0)                                                                  # (ROWS, Bp)

    # Projection weights with the linear bias folded in (ones-row column) and
    # zero padding matching the stream layout.
    w = jnp.zeros((DP, GEP), jnp.float32)
    w = w.at[:D, :G].set(params["genre_proj_w"])
    w = w.at[:D, G].set(params["genre_proj_b"])
    w = w.astype(dt)

    grid = (B_pad // tb,)
    kernel = _make_fm_kernel(DP, GEP)

    out = pl.pallas_call(
        kernel,
        out_shape=jax.ShapeDtypeStruct((1, B_pad), jnp.float32),
        grid_spec=pltpu.PrefetchScalarGridSpec(
            num_scalar_prefetch=0,
            grid=grid,
            in_specs=[
                pl.BlockSpec((ROWS, tb), lambda i: (0, i)),   # combined stream
                pl.BlockSpec((DP, GEP), lambda i: (0, 0)),    # projection weights
            ],
            out_specs=pl.BlockSpec((1, tb), lambda i: (0, i)),  # lane-dense out
        ),
        compiler_params=pltpu.CompilerParams(
            dimension_semantics=("parallel",),
            vmem_limit_bytes=32 << 20),
    )(stream, w)

    return out[0, :B]


def fm_reference(params, user_ids, movie_ids, movie_genres):
    """Pure-JAX reference mirroring the PyTorch forward."""
    ue = jnp.take(params["user_embedding"], user_ids, axis=0)
    me = jnp.take(params["movie_embedding"], movie_ids, axis=0)
    ub = jnp.take(params["user_bias"], user_ids, axis=0)[:, 0]
    mb = jnp.take(params["movie_bias"], movie_ids, axis=0)[:, 0]
    ge = (movie_genres.astype(jnp.float32) @ params["genre_proj_w"].T
          + params["genre_proj_b"])
    bias = params["global_bias"][0] + ub + mb
    um = jnp.sum(ue * me, axis=1)
    ug = jnp.sum(ue * ge, axis=1)
    mg = jnp.sum(me * ge, axis=1)
    return bias + um + ug + mg


def init_params(key, num_users, num_movies, num_genres, embedding_dim=16):
    k1, k2, k3, k4 = jax.random.split(key, 4)
    bound = 1.0 / (num_genres ** 0.5)   # default nn.Linear bias init
    return {
        "user_embedding": 0.01 * jax.random.normal(k1, (num_users, embedding_dim), jnp.float32),
        "movie_embedding": 0.01 * jax.random.normal(k2, (num_movies, embedding_dim), jnp.float32),
        "global_bias": jnp.zeros((1,), jnp.float32),
        "user_bias": jnp.zeros((num_users, 1), jnp.float32),
        "movie_bias": jnp.zeros((num_movies, 1), jnp.float32),
        "genre_proj_w": 0.01 * jax.random.normal(k3, (embedding_dim, num_genres), jnp.float32),
        "genre_proj_b": jax.random.uniform(k4, (embedding_dim,), jnp.float32, -bound, bound),
    }


if __name__ == "__main__":
    num_users, num_movies, num_genres, embedding_dim = 32, 48, 18, 16

    key = jax.random.PRNGKey(0)
    kp, ku, km, kg = jax.random.split(key, 4)
    params = init_params(kp, num_users, num_movies, num_genres, embedding_dim)

    # --- small batch (single grid step) ---
    B = 8
    user_ids = jax.random.randint(ku, (B,), 0, num_users, dtype=jnp.int32)
    movie_ids = jax.random.randint(km, (B,), 0, num_movies, dtype=jnp.int32)
    movie_genres = jax.random.bernoulli(kg, 0.3, (B, num_genres)).astype(jnp.int32)

    pred = fm_forward(params, user_ids, movie_ids, movie_genres)
    pred = jax.block_until_ready(pred)
    ref = fm_reference(params, user_ids, movie_ids, movie_genres)
    assert pred.shape == (B,)
    assert jnp.allclose(pred, ref, atol=1e-5, rtol=1e-5)

    # --- larger batch (exercises multi-step grid + batch padding) ---
    B2 = 300
    ku2, km2, kg2 = jax.random.split(jax.random.PRNGKey(1), 3)
    user_ids2 = jax.random.randint(ku2, (B2,), 0, num_users, dtype=jnp.int32)
    movie_ids2 = jax.random.randint(km2, (B2,), 0, num_movies, dtype=jnp.int32)
    movie_genres2 = jax.random.bernoulli(kg2, 0.3, (B2, num_genres)).astype(jnp.int32)

    pred2 = fm_forward(params, user_ids2, movie_ids2, movie_genres2)
    pred2 = jax.block_until_ready(pred2)
    ref2 = fm_reference(params, user_ids2, movie_ids2, movie_genres2)
    assert pred2.shape == (B2,)
    assert jnp.allclose(pred2, ref2, atol=1e-5, rtol=1e-5)

    print("KERNEL_OK")
</pallas_src>

<mosaic_0001>
module attributes {stable_mosaic.version = 11 : i64} {
  func.func @kernel(%arg0: i32, %arg1: memref<64x128xf32, #tpu.memory_space<vmem>>, %arg2: memref<16x24xf32, #tpu.memory_space<vmem>>, %arg3: memref<1x128xf32, #tpu.memory_space<vmem>>) attributes {dimension_semantics = [#tpu.dimension_semantics<parallel>], iteration_bounds = array<i64: 1>, scalar_prefetch = 0 : i64, scratch_operands = 0 : i64, tpu.core_type = #tpu.core_type<tc>, window_params = [{transform_indices = @transform_0, window_bounds = array<i64: 64, 128>}, {pipeline_mode = #tpu.pipeline_mode<synchronous>, transform_indices = @transform_1, window_bounds = array<i64: 16, 24>}, {transform_indices = @transform_2, window_bounds = array<i64: 1, 128>}]} {
    %c0 = arith.constant 0 : index
    %c0_0 = arith.constant 0 : index
    %0 = vector.load %arg1[%c0, %c0_0] : memref<64x128xf32, #tpu.memory_space<vmem>>, vector<16x128xf32>
    %c16 = arith.constant 16 : index
    %c0_1 = arith.constant 0 : index
    %1 = vector.load %arg1[%c16, %c0_1] : memref<64x128xf32, #tpu.memory_space<vmem>>, vector<16x128xf32>
    %c32 = arith.constant 32 : index
    %c0_2 = arith.constant 0 : index
    %2 = vector.load %arg1[%c32, %c0_2] : memref<64x128xf32, #tpu.memory_space<vmem>>, vector<24x128xf32>
    %c56 = arith.constant 56 : index
    %c0_3 = arith.constant 0 : index
    %3 = vector.load %arg1[%c56, %c0_3] : memref<64x128xf32, #tpu.memory_space<vmem>>, vector<8x128xf32>
    %c0_4 = arith.constant 0 : index
    %c0_5 = arith.constant 0 : index
    %4 = vector.load %arg2[%c0_4, %c0_5] : memref<16x24xf32, #tpu.memory_space<vmem>>, vector<16x24xf32>
    %cst = arith.constant dense<0.000000e+00> : vector<16x128xf32>
    %5 = tpu.matmul %4, %2, %cst {dimension_numbers = #tpu.dot_dimension_numbers<[1], [0], [0], [1], [0, 0, 1, 1], [], []>} : vector<16x24xf32>, vector<24x128xf32>, vector<16x128xf32> -> vector<16x128xf32>
    %6 = arith.mulf %0, %1 : vector<16x128xf32>
    %7 = arith.addf %0, %1 : vector<16x128xf32>
    %8 = arith.mulf %7, %5 : vector<16x128xf32>
    %9 = arith.addf %6, %8 : vector<16x128xf32>
    %cst_6 = arith.constant dense<0.000000e+00> : vector<128xf32>
    %10 = vector.multi_reduction <add>, %9, %cst_6 [0] : vector<16x128xf32> to vector<128xf32>
    %11 = vector.shape_cast %10 : vector<128xf32> to vector<1x128xf32>
    %cst_7 = arith.constant dense<0.000000e+00> : vector<128xf32>
    %12 = vector.multi_reduction <add>, %3, %cst_7 [0] : vector<8x128xf32> to vector<128xf32>
    %13 = vector.shape_cast %12 : vector<128xf32> to vector<1x128xf32>
    %14 = arith.addf %11, %13 : vector<1x128xf32>
    %c0_8 = arith.constant 0 : index
    %c0_9 = arith.constant 0 : index
    %15 = vector.load %arg3[%c0_8, %c0_9] : memref<1x128xf32, #tpu.memory_space<vmem>>, vector<1x128xf32>
    tpu.vector_store %arg3[%c0_8, %c0_9], %14 {strides = array<i32>} : memref<1x128xf32, #tpu.memory_space<vmem>>, vector<1x128xf32>,
    return
  }
  func.func @transform_0(%arg0: i32) -> (i32, i32) {
    %c0_i32 = arith.constant 0 : i32
    %c0_i32_0 = arith.constant 0 : i32
    return %c0_i32, %arg0 : i32, i32
  }
  func.func @transform_1(%arg0: i32) -> (i32, i32) {
    %c0_i32 = arith.constant 0 : i32
    %c0_i32_0 = arith.constant 0 : i32
    %c0_i32_1 = arith.constant 0 : i32
    return %c0_i32, %c0_i32_0 : i32, i32
  }
  func.func @transform_2(%arg0: i32) -> (i32, i32) {
    %c0_i32 = arith.constant 0 : i32
    %c0_i32_0 = arith.constant 0 : i32
    return %c0_i32, %arg0 : i32, i32
  }
}

</mosaic_0001>

<bundles_post_ra>
// kernel: tpu_custom_call.1
= control target key start
LH: loop header
LB: loop body
LE: loop exit
PB: predicated region body
PF: predicated region fallthrough
CT: control target
= control target key end

     0   :  { %7 = vsyncpa [#allocation3], 0  ;;  %s242_s0 = inlined_call_operand.hbm [shape: f32[64,128], index: 0, kind: input, shape index: {}]   ;;  %s243_s1 = inlined_call_operand.hbm [shape: f32[16,24], index: 1, kind: input, shape index: {}]   ;;  %s244_s2 = inlined_call_operand.hbm [shape: f32[1,128], index: 2, kind: output, shape index: {}]  }
   0x1   :  { %8 = vsyncpa [#allocation6], 0 }
   0x2   :  { %9 = vsyncpa [#allocation4], 0  ;;  %s14_s11 = sshll.u32 %s242_s0, 4  ;;  %s213_s12 = smov [#allocation2]   ;;  %s15_s11 = int_to_ptr.hbm [resolvable:$true] %s14_s11 }
   0x3   :  { %s16_s13 = sshll.u32 %s213_s12, 4  ;;  %s27_s16 = sshll.u32 %s243_s1, 4  ;;  %s17_s13 = int_to_ptr.vmem [resolvable:$true] %s16_s13  ;;  %s28_s16 = int_to_ptr.hbm [resolvable:$true] %s27_s16 }
   0x4   :  { %s214_s17 = smov 128   ;;  %s215_s18 = smov 8  }
   0x5   :  { %22 = dma.hbm_to_vmem [thread:$0]  %s15_s11, 1024, %s17_s13, [#allocation3], %s214_s17, %s214_s17, %s215_s18  }
   0x6   :  { %s216_s19 = smov [#allocation5]  }
   0x7   :  { %s29_s20 = sshll.u32 %s216_s19, 4  ;;  %s30_s20 = int_to_ptr.vmem [resolvable:$true] %s29_s20 }
   0x8   :  { %35 = dma.hbm_to_vmem [thread:$0]  %s28_s16, 256, %s30_s20, [#allocation6], %s214_s17, %s214_s17, %s215_s18  }
   0x9   :  { %207 = dma.done.wait [#allocation3], 1024  }
   0xa   :  { %208 = vsyncadd [#allocation3], 4294966272 }
   0xb   :  { %209 = dma.done.wait [#allocation6], 256  }
   0xc   :  { %210 = vsyncadd [#allocation6], 4294967040  ;;  %v50_v0 = vld [vmem:[#allocation2 + $0x30] sm:$0xff]  ;;  %v49_v1 = vld [vmem:[#allocation2 + $0x28] sm:$0xff]  ;;  %vm54_vm0 = vcmask 195584   ;;  %s217_s0 = smov [#allocation7]  }
   0xd   :  { %74 = vmatpush.msra.mxu0 %v50_v0  ;;  %127 = vmatpush.msra.mxu1 %v50_v0  ;;  %v48_v2 = vld [vmem:[#allocation2 + $0x20] sm:$0xff]  ;;  %v53_v4 = vld [vmem:[#allocation5 + $0x8] sm:$0xff]  ;;  %v51_v5 = vld [vmem:[#allocation2 + $0x38] sm:$0xff]  ;;  %s112_s1 = sshll.u32 %s217_s0, 4  ;;  %s114_s23 = sshll.u32 %s244_s2, 4  ;;  %s113_s1 = int_to_ptr.vmem [resolvable:$true] %s112_s1  ;;  %s115_s23 = int_to_ptr.hbm [resolvable:$true] %s114_s23 }
   0xe   :  { %v52_v3 = vld [vmem:[#allocation5] sm:$0xff]  ;;  %v46_v7 = vld [vmem:[#allocation2 + $0x10] sm:$0xff]  ;;  %v45_v8 = vld [vmem:[#allocation2 + $0x8] sm:$0xff]  ;;  %v99_v10 = vrot.slane %v51_v5, 4 }
   0xf   :  { %75 = vmatpush.msra.mxu0 %v49_v1  ;;  %128 = vmatpush.msra.mxu1 %v49_v1  ;;  %v44_v6 = vld [vmem:[#allocation2] sm:$0xff]  ;;  %v47_v9 = vld [vmem:[#allocation2 + $0x18] sm:$0xff] }
  0x10   :  { %v86_v11 = vadd.f32 %v46_v7, %v44_v6  ;;  %v87_v12 = vadd.f32 %v47_v9, %v45_v8  ;;  %v84_v13 = vmul.f32 %v46_v7, %v44_v6  ;;  %v85_v14 = vmul.f32 %v47_v9, %v45_v8 }
  0x11   :  { %76 = vmatpush.msra.mxu0 %v48_v2  ;;  %129 = vmatpush.msra.mxu1 %v48_v2  ;;  %v100_v15 = vadd.f32 %v99_v10, %v51_v5 }
  0x12   :  { %125 = vmatmul.msk.f32.vlgmr.msra.gmra.mxu0 %vm54_vm0, %v52_v3  ;;  %126 = vmatmul.msk.f32.vlgmr.msra.gmra.mxu1 %vm54_vm0, %v53_v4 }
  0x13   :  { %v101_v22 = vrot.slane %v100_v15, 2 }
  0x15   :  { %v102_v25 = vadd.f32 %v101_v22, %v100_v15 }
  0x17   :  { %v103_v28 = vrot.slane %v102_v25, 1 }
  0x19   :  { %v104_v31 = vadd.f32 %v103_v28, %v102_v25 }
  0x8f   :  { %v78_v16 = vpop.f32.mrf.mxu0  ;;  %v81_v17 = vpop.f32.mrf.mxu1 }
  0x90   :  { %v88_v18 = vmul.f32 %v86_v11, %v78_v16  ;;  %v89_v19 = vmul.f32 %v87_v12, %v81_v17 }
  0x92   :  { %v90_v20 = vadd.f32 %v88_v18, %v84_v13  ;;  %v91_v21 = vadd.f32 %v89_v19, %v85_v14 }
  0x94   :  { %v92_v23 = vadd.f32 %v91_v21, %v90_v20 }
  0x96   :  { %v93_v24 = vrot.slane %v92_v23, 4 }
  0x98   :  { %v94_v26 = vadd.f32 %v93_v24, %v92_v23 }
  0x9a   :  { %v95_v27 = vrot.slane %v94_v26, 2 }
  0x9c   :  { %v96_v29 = vadd.f32 %v95_v27, %v94_v26 }
  0x9e   :  { %v97_v30 = vrot.slane %v96_v29, 1 }
  0xa0   :  { %v98_v32 = vadd.f32 %v97_v30, %v96_v29 }
  0xa2   :  { %v105_v33 = vadd.f32 %v104_v31, %v98_v32 }
  0xa4   :  { %106 = vst [vmem:[#allocation7] sm:$0x1] %v105_v33 }
  0xa5   :  { %117 = dma.vmem_to_hbm [thread:$0]  %s113_s1, 16, %s115_s23, [#allocation4]  }
  0xa6   :  { %211 = dma.done.wait [#allocation4], 16  }
  0xa7   :  { %212 = vsyncadd [#allocation4], 4294967280 }
  0xa8   :  { %122 = vsyncpa [#allocation3], 1 }
  0xa9   :  { %123 = vsyncpa [#allocation6], 1 }
  0xaa   :  { %124 = vsyncpa [#allocation4], 1 }

</bundles_post_ra>
